<compile_context>
chip_gen: v5e
topology: v5e:2x2
jax: 0.10.0
libtpu: 0.0.40
codegen_flags: <defaults>
</compile_context>

<pallas_src>
import functools
import math

import jax
import jax.numpy as jnp
from jax.experimental import pallas as pl
from jax.experimental.pallas import tpu as pltpu

LOG_STD_MAX = 2.0
LOG_STD_MIN = -20.0


def _softplus(y):
    # numerically-stable softplus; transcendentals go to the EUP slot.
    return jnp.maximum(y, 0.0) + jnp.log1p(jnp.exp(-jnp.abs(y)))


def actor_sac_kernel(x_ref, w1_ref, b1_ref, w2_ref, b2_ref,
                     wmu_ref, bmu_ref, wls_ref, bls_ref, noise_ref,
                     act_ref, logp_ref, *, action_dim, act_limit):
    """One batch tile: 4 MXU matmuls + short f32 VPU/EUP tail + 1 XLU reduce."""
    mm_dtype = w1_ref.dtype

    # MLPSequential trunk: Linear -> ReLU -> Linear -> ReLU  (f32 accumulate)
    h = jnp.maximum(
        jnp.dot(x_ref[...], w1_ref[...], preferred_element_type=jnp.float32)
        + b1_ref[...], 0.0)
    h = h.astype(mm_dtype)
    h = jnp.maximum(
        jnp.dot(h, w2_ref[...], preferred_element_type=jnp.float32)
        + b2_ref[...], 0.0)
    h = h.astype(mm_dtype)

    # Split output head -> no intra-vreg lane slice at offset action_dim.
    mu = jnp.dot(h, wmu_ref[...], preferred_element_type=jnp.float32) + bmu_ref[...]
    log_std = jnp.clip(
        jnp.dot(h, wls_ref[...], preferred_element_type=jnp.float32) + bls_ref[...],
        LOG_STD_MIN, LOG_STD_MAX)
    std = jnp.exp(log_std)

    # rsample: pi = mu + std * eps   (eps supplied from outside; z == eps exactly)
    eps = noise_ref[...]
    pi = mu + std * eps

    # Fused log-prob:
    #   Normal(mu,std).log_prob(pi).sum(-1)  == sum(-0.5*eps^2 - log_std) - D*0.5*log(2*pi)
    #   tanh correction: sum(2*(log2 - pi - softplus(-2*pi)))
    # logp_pi = gaussian - correction; constants hoisted out of the reduction.
    per_elem = 2.0 * (pi + _softplus(-2.0 * pi)) - 0.5 * eps * eps - log_std
    const = float(action_dim) * (-0.5 * math.log(2.0 * math.pi) - 2.0 * math.log(2.0))
    logp_ref[...] = jnp.sum(per_elem, axis=-1, keepdims=True) + const

    act_ref[...] = (act_limit * jnp.tanh(pi)).astype(act_ref.dtype)


def actor_sac_forward(x, params, noise, *, action_dim, act_limit,
                      batch_tile=1024, matmul_dtype=jnp.bfloat16):
    """x: (B, input_dim) f32; params: nn.Linear-equivalent (in,out) weights; noise: (B, action_dim)."""
    B, input_dim = x.shape

    # Split the (hidden, 2*action_dim) head into mu / log_std halves (wrapper-side,
    # plain XLA slice -> kernel stays lane-aligned).
    wo, bo = params["wo"], params["bo"]
    wmu, wls = wo[:, :action_dim], wo[:, action_dim:]
    bmu, bls = bo[:, :action_dim], bo[:, action_dim:]

    # bf16 matmul operands, f32 biases / tail.
    w1 = params["w1"].astype(matmul_dtype)
    w2 = params["w2"].astype(matmul_dtype)
    wmu = wmu.astype(matmul_dtype)
    wls = wls.astype(matmul_dtype)
    b1 = params["b1"].astype(jnp.float32)
    b2 = params["b2"].astype(jnp.float32)
    bmu = bmu.astype(jnp.float32)
    bls = bls.astype(jnp.float32)
    x = x.astype(matmul_dtype)
    noise = noise.astype(jnp.float32)

    # Batch tiling: single grid step for small B; tiled + pipelined + megacore
    # 'parallel' for large B.  Tile kept small so 2x double-buffered
    # (x + noise + act + logp) tiles plus resident weights fit v7x's 64 MiB VMEM.
    if B <= batch_tile:
        tb, b_pad = B, B
    else:
        tb = max(8, batch_tile - (batch_tile % 8))
        b_pad = pl.cdiv(B, tb) * tb
    if b_pad != B:
        x = jnp.pad(x, ((0, b_pad - B), (0, 0)))
        noise = jnp.pad(noise, ((0, b_pad - B), (0, 0)))

    kern = functools.partial(actor_sac_kernel,
                             action_dim=action_dim, act_limit=act_limit)

    def batch_map(i):
        return (i, 0)

    def resident_map(i):
        return (0, 0)

    grid_spec = pltpu.PrefetchScalarGridSpec(
        num_scalar_prefetch=0,
        grid=(b_pad // tb,),
        in_specs=[
            pl.BlockSpec((tb, input_dim), batch_map),          # x tile
            pl.BlockSpec(w1.shape, resident_map),              # weights stay resident
            pl.BlockSpec(b1.shape, resident_map),
            pl.BlockSpec(w2.shape, resident_map),
            pl.BlockSpec(b2.shape, resident_map),
            pl.BlockSpec(wmu.shape, resident_map),
            pl.BlockSpec(bmu.shape, resident_map),
            pl.BlockSpec(wls.shape, resident_map),
            pl.BlockSpec(bls.shape, resident_map),
            pl.BlockSpec((tb, action_dim), batch_map),         # noise tile
        ],
        out_specs=(
            pl.BlockSpec((tb, action_dim), batch_map),
            pl.BlockSpec((tb, 1), batch_map),
        ),
    )

    act, logp = pl.pallas_call(
        kern,
        out_shape=(jax.ShapeDtypeStruct((b_pad, action_dim), jnp.float32),
                   jax.ShapeDtypeStruct((b_pad, 1), jnp.float32)),
        grid_spec=grid_spec,
        compiler_params=pltpu.CompilerParams(
            dimension_semantics=("parallel",)),
    )(x, w1, b1, w2, b2, wmu, bmu, wls, bls, noise)

    if b_pad != B:
        act = act[:B]
        logp = logp[:B]
    return act, logp


if __name__ == "__main__":
    # small shapes consistent with the module:
    # batch=8, input_dim=16, hidden_dim=32, num_hidden_layers=2, action_dim=8
    B, input_dim, hidden_dim, action_dim = 8, 16, 32, 8
    act_limit = 1.0

    key = jax.random.PRNGKey(0)
    keys = jax.random.split(key, 8)

    def linear_init(kw, kb, fan_in, fan_out):
        bound = float(1.0 / (fan_in ** 0.5))
        w = jax.random.uniform(kw, (fan_in, fan_out), jnp.float32, -bound, bound)
        b = jax.random.uniform(kb, (1, fan_out), jnp.float32, -bound, bound)
        return w, b

    w1, b1 = linear_init(keys[0], keys[1], input_dim, hidden_dim)
    w2, b2 = linear_init(keys[2], keys[3], hidden_dim, hidden_dim)
    wo, bo = linear_init(keys[4], keys[5], hidden_dim, 2 * action_dim)

    x = jax.random.normal(keys[6], (B, input_dim), jnp.float32)
    noise = jax.random.normal(keys[7], (B, action_dim), jnp.float32)  # rsample eps

    params = dict(w1=w1, b1=b1, w2=w2, b2=b2, wo=wo, bo=bo)

    pi_action, logp_pi = actor_sac_forward(
        x, params, noise, action_dim=action_dim, act_limit=act_limit)
    jax.block_until_ready((pi_action, logp_pi))

    assert pi_action.shape == (B, action_dim)
    assert logp_pi.shape == (B, 1)
    assert bool(jnp.all(jnp.isfinite(pi_action))) and bool(jnp.all(jnp.isfinite(logp_pi)))
    print("KERNEL_OK")
</pallas_src>

<mosaic_0001>
module attributes {stable_mosaic.version = 11 : i64} {
  func.func @actor_sac_kernel(%arg0: i32, %arg1: memref<8x16xbf16, #tpu.memory_space<vmem>>, %arg2: memref<16x32xbf16, #tpu.memory_space<vmem>>, %arg3: memref<1x32xf32, #tpu.memory_space<vmem>>, %arg4: memref<32x32xbf16, #tpu.memory_space<vmem>>, %arg5: memref<1x32xf32, #tpu.memory_space<vmem>>, %arg6: memref<32x8xbf16, #tpu.memory_space<vmem>>, %arg7: memref<1x8xf32, #tpu.memory_space<vmem>>, %arg8: memref<32x8xbf16, #tpu.memory_space<vmem>>, %arg9: memref<1x8xf32, #tpu.memory_space<vmem>>, %arg10: memref<8x8xf32, #tpu.memory_space<vmem>>, %arg11: memref<8x8xf32, #tpu.memory_space<vmem>>, %arg12: memref<8x1xf32, #tpu.memory_space<vmem>>) attributes {dimension_semantics = [#tpu.dimension_semantics<parallel>], iteration_bounds = array<i64: 1>, scalar_prefetch = 0 : i64, scratch_operands = 0 : i64, tpu.core_type = #tpu.core_type<tc>, window_params = [{transform_indices = @transform_0, window_bounds = array<i64: 8, 16>}, {pipeline_mode = #tpu.pipeline_mode<synchronous>, transform_indices = @transform_1, window_bounds = array<i64: 16, 32>}, {pipeline_mode = #tpu.pipeline_mode<synchronous>, transform_indices = @transform_2, window_bounds = array<i64: 1, 32>}, {pipeline_mode = #tpu.pipeline_mode<synchronous>, transform_indices = @transform_3, window_bounds = array<i64: 32, 32>}, {pipeline_mode = #tpu.pipeline_mode<synchronous>, transform_indices = @transform_4, window_bounds = array<i64: 1, 32>}, {pipeline_mode = #tpu.pipeline_mode<synchronous>, transform_indices = @transform_5, window_bounds = array<i64: 32, 8>}, {pipeline_mode = #tpu.pipeline_mode<synchronous>, transform_indices = @transform_6, window_bounds = array<i64: 1, 8>}, {pipeline_mode = #tpu.pipeline_mode<synchronous>, transform_indices = @transform_7, window_bounds = array<i64: 32, 8>}, {pipeline_mode = #tpu.pipeline_mode<synchronous>, transform_indices = @transform_8, window_bounds = array<i64: 1, 8>}, {transform_indices = @transform_9, window_bounds = array<i64: 8, 8>}, {transform_indices = @transform_10, window_bounds = array<i64: 8, 8>}, {transform_indices = @transform_11, window_bounds = array<i64: 8, 1>}]} {
    %c0 = arith.constant 0 : index
    %c0_0 = arith.constant 0 : index
    %0 = vector.load %arg1[%c0, %c0_0] : memref<8x16xbf16, #tpu.memory_space<vmem>>, vector<8x16xbf16>
    %c0_1 = arith.constant 0 : index
    %c0_2 = arith.constant 0 : index
    %1 = vector.load %arg2[%c0_1, %c0_2] : memref<16x32xbf16, #tpu.memory_space<vmem>>, vector<16x32xbf16>
    %cst = arith.constant dense<0.000000e+00> : vector<8x32xf32>
    %2 = tpu.matmul %0, %1, %cst {dimension_numbers = #tpu.dot_dimension_numbers<[1], [0], [0], [1], [0, 0, 1, 1], [], []>} : vector<8x16xbf16>, vector<16x32xbf16>, vector<8x32xf32> -> vector<8x32xf32>
    %c0_3 = arith.constant 0 : index
    %c0_4 = arith.constant 0 : index
    %3 = vector.load %arg3[%c0_3, %c0_4] : memref<1x32xf32, #tpu.memory_space<vmem>>, vector<1x32xf32>
    %4 = vector.broadcast %3 : vector<1x32xf32> to vector<8x32xf32>
    %5 = arith.addf %2, %4 : vector<8x32xf32>
    %cst_5 = arith.constant 0.000000e+00 : f32
    %6 = vector.broadcast %cst_5 : f32 to vector<8x32xf32>
    %7 = arith.maximumf %5, %6 : vector<8x32xf32>
    %8 = arith.truncf %7 : vector<8x32xf32> to vector<8x32xbf16>
    %c0_6 = arith.constant 0 : index
    %c0_7 = arith.constant 0 : index
    %9 = vector.load %arg4[%c0_6, %c0_7] : memref<32x32xbf16, #tpu.memory_space<vmem>>, vector<32x32xbf16>
    %cst_8 = arith.constant dense<0.000000e+00> : vector<8x32xf32>
    %10 = tpu.matmul %8, %9, %cst_8 {dimension_numbers = #tpu.dot_dimension_numbers<[1], [0], [0], [1], [0, 0, 1, 1], [], []>} : vector<8x32xbf16>, vector<32x32xbf16>, vector<8x32xf32> -> vector<8x32xf32>
    %c0_9 = arith.constant 0 : index
    %c0_10 = arith.constant 0 : index
    %11 = vector.load %arg5[%c0_9, %c0_10] : memref<1x32xf32, #tpu.memory_space<vmem>>, vector<1x32xf32>
    %12 = vector.broadcast %11 : vector<1x32xf32> to vector<8x32xf32>
    %13 = arith.addf %10, %12 : vector<8x32xf32>
    %cst_11 = arith.constant 0.000000e+00 : f32
    %14 = vector.broadcast %cst_11 : f32 to vector<8x32xf32>
    %15 = arith.maximumf %13, %14 : vector<8x32xf32>
    %16 = arith.truncf %15 : vector<8x32xf32> to vector<8x32xbf16>
    %c0_12 = arith.constant 0 : index
    %c0_13 = arith.constant 0 : index
    %17 = vector.load %arg6[%c0_12, %c0_13] : memref<32x8xbf16, #tpu.memory_space<vmem>>, vector<32x8xbf16>
    %cst_14 = arith.constant dense<0.000000e+00> : vector<8x8xf32>
    %18 = tpu.matmul %16, %17, %cst_14 {dimension_numbers = #tpu.dot_dimension_numbers<[1], [0], [0], [1], [0, 0, 1, 1], [], []>} : vector<8x32xbf16>, vector<32x8xbf16>, vector<8x8xf32> -> vector<8x8xf32>
    %c0_15 = arith.constant 0 : index
    %c0_16 = arith.constant 0 : index
    %19 = vector.load %arg7[%c0_15, %c0_16] : memref<1x8xf32, #tpu.memory_space<vmem>>, vector<1x8xf32>
    %20 = vector.broadcast %19 : vector<1x8xf32> to vector<8x8xf32>
    %21 = arith.addf %18, %20 : vector<8x8xf32>
    %c0_17 = arith.constant 0 : index
    %c0_18 = arith.constant 0 : index
    %22 = vector.load %arg8[%c0_17, %c0_18] : memref<32x8xbf16, #tpu.memory_space<vmem>>, vector<32x8xbf16>
    %cst_19 = arith.constant dense<0.000000e+00> : vector<8x8xf32>
    %23 = tpu.matmul %16, %22, %cst_19 {dimension_numbers = #tpu.dot_dimension_numbers<[1], [0], [0], [1], [0, 0, 1, 1], [], []>} : vector<8x32xbf16>, vector<32x8xbf16>, vector<8x8xf32> -> vector<8x8xf32>
    %c0_20 = arith.constant 0 : index
    %c0_21 = arith.constant 0 : index
    %24 = vector.load %arg9[%c0_20, %c0_21] : memref<1x8xf32, #tpu.memory_space<vmem>>, vector<1x8xf32>
    %25 = vector.broadcast %24 : vector<1x8xf32> to vector<8x8xf32>
    %26 = arith.addf %23, %25 : vector<8x8xf32>
    %cst_22 = arith.constant -2.000000e+01 : f32
    %cst_23 = arith.constant 2.000000e+00 : f32
    %27 = vector.broadcast %cst_22 : f32 to vector<8x8xf32>
    %28 = arith.maximumf %27, %26 : vector<8x8xf32>
    %29 = vector.broadcast %cst_23 : f32 to vector<8x8xf32>
    %30 = arith.minimumf %29, %28 : vector<8x8xf32>
    %31 = math.exp %30 : vector<8x8xf32>
    %c0_24 = arith.constant 0 : index
    %c0_25 = arith.constant 0 : index
    %32 = vector.load %arg10[%c0_24, %c0_25] : memref<8x8xf32, #tpu.memory_space<vmem>>, vector<8x8xf32>
    %33 = arith.mulf %31, %32 : vector<8x8xf32>
    %34 = arith.addf %21, %33 : vector<8x8xf32>
    %cst_26 = arith.constant -2.000000e+00 : f32
    %35 = vector.broadcast %cst_26 : f32 to vector<8x8xf32>
    %36 = arith.mulf %35, %34 : vector<8x8xf32>
    %cst_27 = arith.constant 0.000000e+00 : f32
    %37 = vector.broadcast %cst_27 : f32 to vector<8x8xf32>
    %38 = arith.maximumf %36, %37 : vector<8x8xf32>
    %39 = math.absf %36 : vector<8x8xf32>
    %cst_28 = arith.constant 0.000000e+00 : f32
    %40 = vector.broadcast %cst_28 : f32 to vector<8x8xf32>
    %41 = arith.subf %40, %39 : vector<8x8xf32>
    %42 = math.exp %41 : vector<8x8xf32>
    %43 = math.log1p %42 : vector<8x8xf32>
    %44 = arith.addf %38, %43 : vector<8x8xf32>
    %45 = arith.addf %34, %44 : vector<8x8xf32>
    %cst_29 = arith.constant 2.000000e+00 : f32
    %46 = vector.broadcast %cst_29 : f32 to vector<8x8xf32>
    %47 = arith.mulf %46, %45 : vector<8x8xf32>
    %cst_30 = arith.constant 5.000000e-01 : f32
    %48 = vector.broadcast %cst_30 : f32 to vector<8x8xf32>
    %49 = arith.mulf %48, %32 : vector<8x8xf32>
    %50 = arith.mulf %49, %32 : vector<8x8xf32>
    %51 = arith.subf %47, %50 : vector<8x8xf32>
    %52 = arith.subf %51, %30 : vector<8x8xf32>
    %cst_31 = arith.constant dense<0.000000e+00> : vector<8xf32>
    %53 = vector.multi_reduction <add>, %52, %cst_31 [1] : vector<8x8xf32> to vector<8xf32>
    %54 = vector.shape_cast %53 : vector<8xf32> to vector<8x1xf32>
    %cst_32 = arith.constant -18.441864 : f32
    %55 = vector.broadcast %cst_32 : f32 to vector<8x1xf32>
    %56 = arith.addf %54, %55 : vector<8x1xf32>
    %c0_33 = arith.constant 0 : index
    %c0_34 = arith.constant 0 : index
    %57 = vector.load %arg12[%c0_33, %c0_34] : memref<8x1xf32, #tpu.memory_space<vmem>>, vector<8x1xf32>
    tpu.vector_store %arg12[%c0_33, %c0_34], %56 {strides = array<i32>} : memref<8x1xf32, #tpu.memory_space<vmem>>, vector<8x1xf32>,
    %58 = math.tanh %34 : vector<8x8xf32>
    %cst_35 = arith.constant 1.000000e+00 : f32
    %59 = vector.broadcast %cst_35 : f32 to vector<8x8xf32>
    %60 = arith.mulf %59, %58 : vector<8x8xf32>
    %c0_36 = arith.constant 0 : index
    %c0_37 = arith.constant 0 : index
    %61 = vector.load %arg11[%c0_36, %c0_37] : memref<8x8xf32, #tpu.memory_space<vmem>>, vector<8x8xf32>
    tpu.vector_store %arg11[%c0_36, %c0_37], %60 {strides = array<i32>} : memref<8x8xf32, #tpu.memory_space<vmem>>, vector<8x8xf32>,
    return
  }
  func.func @transform_0(%arg0: i32) -> (i32, i32) {
    %c0_i32 = arith.constant 0 : i32
    %c0_i32_0 = arith.constant 0 : i32
    return %arg0, %c0_i32 : i32, i32
  }
  func.func @transform_1(%arg0: i32) -> (i32, i32) {
    %c0_i32 = arith.constant 0 : i32
    %c0_i32_0 = arith.constant 0 : i32
    %c0_i32_1 = arith.constant 0 : i32
    return %c0_i32, %c0_i32_0 : i32, i32
  }
  func.func @transform_2(%arg0: i32) -> (i32, i32) {
    %c0_i32 = arith.constant 0 : i32
    %c0_i32_0 = arith.constant 0 : i32
    %c0_i32_1 = arith.constant 0 : i32
    return %c0_i32, %c0_i32_0 : i32, i32
  }
  func.func @transform_3(%arg0: i32) -> (i32, i32) {
    %c0_i32 = arith.constant 0 : i32
    %c0_i32_0 = arith.constant 0 : i32
    %c0_i32_1 = arith.constant 0 : i32
    return %c0_i32, %c0_i32_0 : i32, i32
  }
  func.func @transform_4(%arg0: i32) -> (i32, i32) {
    %c0_i32 = arith.constant 0 : i32
    %c0_i32_0 = arith.constant 0 : i32
    %c0_i32_1 = arith.constant 0 : i32
    return %c0_i32, %c0_i32_0 : i32, i32
  }
  func.func @transform_5(%arg0: i32) -> (i32, i32) {
    %c0_i32 = arith.constant 0 : i32
    %c0_i32_0 = arith.constant 0 : i32
    %c0_i32_1 = arith.constant 0 : i32
    return %c0_i32, %c0_i32_0 : i32, i32
  }
  func.func @transform_6(%arg0: i32) -> (i32, i32) {
    %c0_i32 = arith.constant 0 : i32
    %c0_i32_0 = arith.constant 0 : i32
    %c0_i32_1 = arith.constant 0 : i32
    return %c0_i32, %c0_i32_0 : i32, i32
  }
  func.func @transform_7(%arg0: i32) -> (i32, i32) {
    %c0_i32 = arith.constant 0 : i32
    %c0_i32_0 = arith.constant 0 : i32
    %c0_i32_1 = arith.constant 0 : i32
    return %c0_i32, %c0_i32_0 : i32, i32
  }
  func.func @transform_8(%arg0: i32) -> (i32, i32) {
    %c0_i32 = arith.constant 0 : i32
    %c0_i32_0 = arith.constant 0 : i32
    %c0_i32_1 = arith.constant 0 : i32
    return %c0_i32, %c0_i32_0 : i32, i32
  }
  func.func @transform_9(%arg0: i32) -> (i32, i32) {
    %c0_i32 = arith.constant 0 : i32
    %c0_i32_0 = arith.constant 0 : i32
    return %arg0, %c0_i32 : i32, i32
  }
  func.func @transform_10(%arg0: i32) -> (i32, i32) {
    %c0_i32 = arith.constant 0 : i32
    %c0_i32_0 = arith.constant 0 : i32
    return %arg0, %c0_i32 : i32, i32
  }
  func.func @transform_11(%arg0: i32) -> (i32, i32) {
    %c0_i32 = arith.constant 0 : i32
    %c0_i32_0 = arith.constant 0 : i32
    return %arg0, %c0_i32 : i32, i32
  }
}

</mosaic_0001>

<bundles_post_ra>
// kernel: tpu_custom_call.1
= control target key start
LH: loop header
LB: loop body
LE: loop exit
PB: predicated region body
PF: predicated region fallthrough
CT: control target
= control target key end

     0   :  { %17 = vsyncpa [#allocation3], 0  ;;  %s512_s0 = inlined_call_operand.vmem [shape: bf16[8,16], index: 0, kind: input, shape index: {}]   ;;  %s513_s1 = inlined_call_operand.vmem [shape: bf16[16,32], index: 1, kind: input, shape index: {}]   ;;  %s514_s2 = inlined_call_operand.hbm [shape: f32[1,32], index: 2, kind: input, shape index: {}]   ;;  %s515_s3 = inlined_call_operand.vmem [shape: bf16[32,32], index: 3, kind: input, shape index: {}]   ;;  %s516_s4 = inlined_call_operand.hbm [shape: f32[1,32], index: 4, kind: input, shape index: {}]   ;;  %s517_s5 = inlined_call_operand.vmem [shape: bf16[32,8], index: 5, kind: input, shape index: {}]   ;;  %s518_s6 = inlined_call_operand.vmem [shape: f32[1,8], index: 6, kind: input, shape index: {}]   ;;  %s519_s7 = inlined_call_operand.vmem [shape: bf16[32,8], index: 7, kind: input, shape index: {}]   ;;  %s520_s8 = inlined_call_operand.vmem [shape: f32[1,8], index: 8, kind: input, shape index: {}]   ;;  %s521_s9 = inlined_call_operand.vmem [shape: f32[8,8], index: 9, kind: input, shape index: {}]   ;;  %s522_s10 = inlined_call_operand.hbm [shape: f32[8,8], index: 10, kind: output, shape index: {0}]   ;;  %s523_s11 = inlined_call_operand.vmem [shape: f32[8,1], index: 11, kind: output, shape index: {1}]  }
   0x1   :  { %18 = vsyncpa [#allocation6], 0 }
   0x2   :  { %19 = vsyncpa [#allocation4], 0  ;;  %s29_s19 = sshll.u32 %s514_s2, 4  ;;  %s399_s20 = smov [#allocation2]   ;;  %s30_s19 = int_to_ptr.hbm [resolvable:$true] %s29_s19 }
   0x3   :  { %s31_s21 = sshll.u32 %s399_s20, 4  ;;  %s42_s24 = sshll.u32 %s516_s4, 4  ;;  %s32_s21 = int_to_ptr.vmem [resolvable:$true] %s31_s21  ;;  %s43_s24 = int_to_ptr.hbm [resolvable:$true] %s42_s24 }
   0x4   :  { %34 = dma.hbm_to_vmem [thread:$0]  %s30_s19, 16, %s32_s21, [#allocation3]  }
   0x5   :  { %s400_s25 = smov [#allocation5]  }
   0x6   :  { %s44_s26 = sshll.u32 %s400_s25, 4  ;;  %s45_s26 = int_to_ptr.vmem [resolvable:$true] %s44_s26 }
   0x7   :  { %47 = dma.hbm_to_vmem [thread:$0]  %s43_s24, 16, %s45_s26, [#allocation6]  }
   0x8   :  { %393 = dma.done.wait [#allocation3], 16  }
   0x9   :  { %394 = vsyncadd [#allocation3], 4294967280 }
   0xa   :  { %395 = dma.done.wait [#allocation6], 16  }
   0xb   :  { %396 = vsyncadd [#allocation6], 4294967280  ;;  %v299_v0 = vld [vmem:[%s513_s1] sm:$0xff]  ;;  %vm80_vm0 = vcmask 130048   ;;  %v301_v2 = vld [vmem:[%s515_s3 + $0x8] sm:$0xff]  ;;  %vm119_vm1 = vcmask 261120  }
   0xc   :  { %91 = vmatpush.bf16.msra.mxu0 %v299_v0  ;;  %v67_v1 = vld [vmem:[%s512_s0] sm:$0xf]  ;;  %129 = vmatpush.bf16.msra.mxu1 %v301_v2  ;;  %v303_v10 = vld [vmem:[%s517_s5 + $0x8] sm:$0xff]  ;;  %vm236_vm2 = vcmask 64512   ;;  %s252_s24 = sshll.u32 %s522_s10, 4  ;;  %vm241_vm4 = vcmask 7168   ;;  %s253_s24 = int_to_ptr.hbm [resolvable:$true] %s252_s24 }
   0xd   :  { %v300_v3 = vld [vmem:[%s515_s3] sm:$0xff]  ;;  %v305_v11 = vld [vmem:[%s519_s7 + $0x8] sm:$0xff]  ;;  %167 = vmatpush.bf16.msra.mxu2 %v303_v10 }
   0xe   :  { %v309_v4 = vld [vmem:[#allocation2] ss:$0 sm:$0xff]  ;;  %200 = vmatpush.bf16.msra.mxu3 %v305_v11  ;;  %v310_v14 = vld [vmem:[#allocation5] ss:$0 sm:$0xff] }
   0xf   :  { %271 = vmatmul.msk.bf16.vlgmr.msra.gmra.mxu0 %vm80_vm0, %v67_v1  ;;  %v302_v12 = vld [vmem:[%s517_s5] sm:$0xff] }
  0x10   :  { %130 = vmatpush.bf16.msra.mxu1 %v300_v3  ;;  %v304_v13 = vld [vmem:[%s519_s7] sm:$0xff] }
  0x11   :  { %168 = vmatpush.bf16.msra.mxu2 %v302_v12  ;;  %v312_v20 = vld [vmem:[%s520_s8] ss:$0 sm:$0xff] }
  0x12   :  { %201 = vmatpush.bf16.msra.mxu3 %v304_v13  ;;  %v311_v29 = vld [vmem:[%s518_s6] ss:$0 sm:$0xff]  ;;  %s401_s6 = smov [#allocation7]  }
  0x13   :  { %v211_v30 = vld [vmem:[%s521_s9] sm:$0xff]  ;;  %s250_s8 = sshll.u32 %s401_s6, 4  ;;  %s251_s8 = int_to_ptr.vmem [resolvable:$true] %s250_s8 }
  0x14   :  { %v232_v49 = vmul.f32 0.5, %v211_v30 }
  0x16   :  { %v233_v53 = vmul.f32 %v232_v49, %v211_v30 }
  0x8c   :  { %v93_v5 = vpop.f32.mrf.mxu0 }
  0x8d   :  { %v94_v6 = vadd.f32 %v309_v4, %v93_v5 }
  0x8f   :  { %v97_v7 = vmax.f32 %v94_v6, 0.0 }
  0x91   :  { %v98_v8 = vpack.c.bf16 %v97_v7, %v97_v7 }
  0x93   :  { %280 = vmatmul.msk.bf16.vlgmr.msra.gmra.mxu1 %vm119_vm1, %v98_v8 }
  0x94   :  { %v95_v9 = vpop.f32.mrf.mxu0 }
 0x110   :  { %v132_v15 = vpop.f32.mrf.mxu1 }
 0x111   :  { %v133_v16 = vadd.f32 %v310_v14, %v132_v15 }
 0x113   :  { %v136_v17 = vmax.f32 %v133_v16, 0.0 }
 0x115   :  { %v137_v18 = vpack.c.bf16 %v136_v17, %v136_v17 }
 0x117   :  { %289 = vmatmul.msk.bf16.vlgmr.msra.gmra.mxu2 %vm119_vm1, %v137_v18  ;;  %298 = vmatmul.msk.bf16.vlgmr.msra.gmra.mxu3 %vm119_vm1, %v137_v18 }
 0x118   :  { %v134_v19 = vpop.f32.mrf.mxu1 }
 0x19a   :  { %v170_v21 = vpop.f32.mrf.mxu2  ;;  %v203_v22 = vpop.f32.mrf.mxu3 }
 0x19b   :  { %v204_v23 = vadd.f32 %v312_v20, %v203_v22  ;;  %v171_v32 = vadd.f32 %v311_v29, %v170_v21 }
 0x19d   :  { %v207_v24 = vmax.f32 %v204_v23, -20.0 }
 0x19f   :  { %v208_v25 = vmin.f32 %v207_v24, 2.0 }
 0x1a1   :  { %v209_v26 = vmul.f32 1.442695, %v208_v25 }
 0x1a2   :  { %v172_v27 = vpop.f32.mrf.mxu2  ;;  %v205_v28 = vpop.f32.mrf.mxu3 }
 0x1a3   :  { %313 = vpow2.f32 %v209_v26 }
 0x1a9   :  { %v314_v31 = vpop.eup %313 }
 0x1aa   :  { %v212_v33 = vmul.f32 %v314_v31, %v211_v30 }
 0x1ac   :  { %v213_v34 = vadd.f32 %v212_v33, %v171_v32 }
 0x1ae   :  { %v214_v35 = vmul.f32 -2.0, %v213_v34  ;;  %315 = vtanh.f32 %v213_v34 }
 0x1b0   :  { %v216_v36 = vand.u32 2147483647, %v214_v35  ;;  %v215_v48 = vmax.f32 %v214_v35, 0.0 }
 0x1b2   :  { %v217_v37 = vsub.f32 0.0, %v216_v36 }
 0x1b4   :  { %v316_v38 = vpop.eup %315  ;;  %v218_v39 = vmul.f32 1.442695, %v217_v37 }
 0x1b5   :  { %244 = vst.msk [vmem:[#allocation7] sm:$0xff] %vm236_vm2, %v316_v38 }
 0x1b6   :  { %317 = vpow2.f32 %v218_v39  ;;  %255 = dma.vmem_to_hbm [thread:$0]  %s251_s8, 128, %s253_s24, [#allocation4]  }
 0x1bc   :  { %v318_v40 = vpop.eup %317 }
 0x1bd   :  { %v220_v41 = vadd.f32 1.0, %v318_v40  ;;  %v223_v42 = vmul.f32 -0.5, %v318_v40  ;;  %v226_v44 = vand.u32 2147483647, %v318_v40 }
 0x1bf   :  { %319 = vlog2.f32 %v220_v41  ;;  %v224_v43 = vadd.f32 1.0, %v223_v42  ;;  %vm227_vm3 = vcmp.lt.f32.partialorder %v226_v44, 0.0004427343 }
 0x1c1   :  { %v225_v47 = vmul.f32 %v318_v40, %v224_v43 }
 0x1c5   :  { %v320_v45 = vpop.eup %319 }
 0x1c6   :  { %v222_v46 = vmul.f32 0.6931472, %v320_v45 }
 0x1c8   :  { %v228_v50 = vsel %vm227_vm3, %v225_v47, %v222_v46 }
 0x1c9   :  { %v229_v51 = vadd.f32 %v228_v50, %v215_v48 }
 0x1cb   :  { %v230_v52 = vadd.f32 %v229_v51, %v213_v34 }
 0x1cd   :  { %v231_v54 = vmul.f32 2.0, %v230_v52 }
 0x1cf   :  { %v234_v55 = vsub.f32 %v231_v54, %v233_v53 }
 0x1d1   :  { %v235_v56 = vsub.f32 %v234_v55, %v208_v25 }
 0x1d3   :  { %v237_v57 = vsel %vm236_vm2, %v235_v56, 0.0 }
 0x1d4   :  { %238 = vadd.xlane.f32.xlu0 %v237_v57 }
 0x247   :  { %v239_v58 = vpop.xlane.xlu0 %238 }
 0x248   :  { %v240_v59 = vadd.f32 -18.441864, %v239_v58 }
 0x24a   :  { %242 = vst.msk [vmem:[%s523_s11] sm:$0xff] %vm241_vm4, %v240_v59 }
 0x24b   :  { %397 = dma.done.wait [#allocation4], 128  }
 0x24c   :  { %398 = vsyncadd [#allocation4], 4294967168 }
 0x24d   :  { %264 = vsyncpa [#allocation3], 1 }
 0x24e   :  { %265 = vsyncpa [#allocation6], 1 }
 0x24f   :  { %266 = vsyncpa [#allocation4], 1 }

</bundles_post_ra>
